<compile_context>
chip_gen: v7x
topology: tpu7x:2x2x1
jax: 0.10.0
libtpu: 0.0.40
codegen_flags: <defaults>
</compile_context>

<pallas_src>
import functools

import jax
import jax.numpy as jnp
from jax import lax
from jax.experimental import pallas as pl
from jax.experimental.pallas import tpu as pltpu

K_S = 7            # local attention kernel size (same as reference)
K2 = K_S * K_S
NC = 32            # MLP hidden width (reference default 256; shrunk for demo)
INIT_GAIN = 0.02   # 'normal' init gain, as in init_weights
LANE = 128
SUB = 8


def _round_up(x, m):
    return (x + m - 1) // m * m


@functools.lru_cache(maxsize=1)
def _vmem_budget_bytes():
    """Generation-aware scoped-VMEM target: ~3/4 of physical VMEM.

    -> ~48 MiB on v7x (64 MiB physical), ~96 MiB on v5e/v6e (128 MiB physical).
    """
    cap = 64 * 1024 * 1024
    try:
        info_fn = getattr(pltpu, "get_tpu_info", None)
        if info_fn is not None:
            cap = getattr(info_fn(), "vmem_capacity_bytes", None) or cap
    except Exception:
        pass
    return int(min(128 * 1024 * 1024, max(32 * 1024 * 1024, cap * 3 // 4)))


# ---------------------------------------------------------------------------
# Pallas kernels
# ---------------------------------------------------------------------------

def _attn_stats_kernel(q_ref, f_ref, m_ref, l_ref, *, l_valid, tl):
    # Pass 1 of the L-tiled global attention: online row max / normaliser.
    # q_ref: (1, P, C) bf16 selected queries; f_ref: (1, TL, C) bf16 feat tile.
    # m_ref / l_ref: (1, P, 1) f32 accumulators, resident across the L axis.
    li = pl.program_id(1)

    @pl.when(li == 0)
    def _():
        m_ref[...] = jnp.full_like(m_ref, -1e30)
        l_ref[...] = jnp.zeros_like(l_ref)

    q = q_ref[0]                                               # (P, C)
    f = f_ref[0]                                               # (TL, C)
    s = lax.dot_general(q, f, dimension_numbers=(((1,), (1,)), ((), ())),
                        preferred_element_type=jnp.float32)    # (P, TL)
    col = li * tl + lax.broadcasted_iota(jnp.int32, s.shape, 1)
    s = jnp.where(col < l_valid, s, -1e30)                     # mask padded columns
    m_old = m_ref[0]                                           # (P, 1)
    m_new = jnp.maximum(m_old, jnp.max(s, axis=-1, keepdims=True))
    l_ref[0] = (l_ref[0] * jnp.exp(m_old - m_new)
                + jnp.sum(jnp.exp(s - m_new), axis=-1, keepdims=True))
    m_ref[0] = m_new


def _attn_emit_kernel(q_ref, f_ref, m_ref, l_ref, attn_ref, o_ref, *, l_valid, tl):
    # Pass 2: exact softmax rows streamed out per L tile + out = attn @ feat
    # accumulated in the resident (1, P, C) output block.
    li = pl.program_id(1)

    @pl.when(li == 0)
    def _():
        o_ref[...] = jnp.zeros_like(o_ref)

    q = q_ref[0]
    f = f_ref[0]
    s = lax.dot_general(q, f, dimension_numbers=(((1,), (1,)), ((), ())),
                        preferred_element_type=jnp.float32)    # (P, TL)
    col = li * tl + lax.broadcasted_iota(jnp.int32, s.shape, 1)
    s = jnp.where(col < l_valid, s, -1e30)
    p = jnp.exp(s - m_ref[0]) * pl.reciprocal(l_ref[0], approx=True)
    attn_ref[0] = p
    o_ref[0] += jnp.dot(p.astype(f.dtype), f, preferred_element_type=jnp.float32)


def select_attention(q_sel, feat_bf):
    """attn = softmax(q_sel @ feat^T, -1); out = attn @ feat.

    Tiled over L (online-softmax stats pass + emit pass) so per-step VMEM is
    independent of L and the (L, L) matrix is never formed.
    """
    B, P, C = q_sel.shape
    _, L, _ = feat_bf.shape
    budget = _vmem_budget_bytes()
    # per-L-column bytes: double-buffered feat (bf16) + attn (f32) tiles.
    per_col = 2 * (C * 2) + 2 * (P * 4)
    tl_cap = 2048 if budget > 64 * 1024 * 1024 else 1024
    tl = max(LANE, min(tl_cap, ((budget // 4) // per_col) // LANE * LANE))
    tl = min(tl, _round_up(L, LANE))
    l_pad = _round_up(L, tl)
    if l_pad != L:
        feat_bf = jnp.pad(feat_bf, ((0, 0), (0, l_pad - L), (0, 0)))
    grid = (B, l_pad // tl)

    q_spec = pl.BlockSpec((1, P, C), lambda b, l: (b, 0, 0))
    f_spec = pl.BlockSpec((1, tl, C), lambda b, l: (b, l, 0))
    stat_spec = pl.BlockSpec((1, P, 1), lambda b, l: (b, 0, 0))
    cparams = pltpu.CompilerParams(
        dimension_semantics=("parallel", "arbitrary"),
        vmem_limit_bytes=budget)

    m, lsum = pl.pallas_call(
        functools.partial(_attn_stats_kernel, l_valid=L, tl=tl),
        grid=grid,
        in_specs=[q_spec, f_spec],
        out_specs=(stat_spec, stat_spec),
        out_shape=(jax.ShapeDtypeStruct((B, P, 1), jnp.float32),
                   jax.ShapeDtypeStruct((B, P, 1), jnp.float32)),
        compiler_params=cparams,
    )(q_sel, feat_bf)

    attn, out = pl.pallas_call(
        functools.partial(_attn_emit_kernel, l_valid=L, tl=tl),
        grid=grid,
        in_specs=[q_spec, f_spec, stat_spec, stat_spec],
        out_specs=(pl.BlockSpec((1, P, tl), lambda b, l: (b, 0, l)),
                   pl.BlockSpec((1, P, C), lambda b, l: (b, 0, 0))),
        out_shape=(jax.ShapeDtypeStruct((B, P, l_pad), jnp.float32),
                   jax.ShapeDtypeStruct((B, P, C), jnp.float32)),
        compiler_params=cparams,
    )(q_sel, feat_bf, m, lsum)
    return attn[:, :, :L], out


def _bmm_kernel(a_ref, b_ref, o_ref):
    @pl.when(pl.program_id(1) == 0)
    def _():
        o_ref[...] = jnp.zeros_like(o_ref)
    o_ref[0] += jnp.dot(a_ref[0].astype(jnp.bfloat16), b_ref[0],
                        preferred_element_type=jnp.float32)


def bmm(attn, feat_bf):
    """Batched matmul (precomputed attn_mats path), tiled over L."""
    B, P, L = attn.shape
    _, _, C = feat_bf.shape
    budget = _vmem_budget_bytes()
    per_col = 2 * (C * 2) + 2 * (P * 4)
    tl_cap = 2048 if budget > 64 * 1024 * 1024 else 1024
    tl = max(LANE, min(tl_cap, ((budget // 4) // per_col) // LANE * LANE))
    tl = min(tl, _round_up(L, LANE))
    l_pad = _round_up(L, tl)
    if l_pad != L:
        attn = jnp.pad(attn, ((0, 0), (0, 0), (0, l_pad - L)))
        feat_bf = jnp.pad(feat_bf, ((0, 0), (0, l_pad - L), (0, 0)))
    return pl.pallas_call(
        _bmm_kernel,
        grid=(B, l_pad // tl),
        in_specs=[pl.BlockSpec((1, P, tl), lambda b, l: (b, 0, l)),
                  pl.BlockSpec((1, tl, C), lambda b, l: (b, l, 0))],
        out_specs=pl.BlockSpec((1, P, C), lambda b, l: (b, 0, 0)),
        out_shape=jax.ShapeDtypeStruct((B, P, C), jnp.float32),
        compiler_params=pltpu.CompilerParams(
            dimension_semantics=("parallel", "arbitrary"),
            vmem_limit_bytes=budget),
    )(attn, feat_bf)


def _local_entropy_kernel(k_ref, q_ref, o_ref, *, c_chunk):
    # k_ref: (tn, 49, C) bf16 local "keys" (reference's scrambled unfold layout).
    # q_ref: (tn, C) f32 queries; o_ref: (1, tn) f32 entropies (lane-dense).
    tn, k2, c = k_ref.shape
    q = q_ref[...]
    dots = jnp.zeros((tn, k2), jnp.float32)
    # Reduce over C in chunks so the (tn, 49, chunk) product temp stays bounded
    # regardless of C (review: avoid the full (tn, 49, C) VMEM temporary).
    for c0 in range(0, c, c_chunk):
        c1 = min(c0 + c_chunk, c)
        kc = k_ref[:, :, c0:c1].astype(jnp.float32)            # (tn, 49, cc)
        qc = q[:, c0:c1]
        dots = dots + jnp.sum(kc * qc[:, None, :], axis=-1)    # (tn, 49)
    d = dots.T                                                 # (49, tn): rows on lanes
    m = jnp.max(d, axis=0, keepdims=True)                      # (1, tn)
    dm = d - m
    e = jnp.exp(dm)
    z = jnp.sum(e, axis=0, keepdims=True)
    t = jnp.sum(e * dm, axis=0, keepdims=True)
    # H = -sum p log p = logZ - E_p[d - m]; underflowed e -> 0 contributes 0,
    # matching the reference's -log(attn) isinf -> 0 guard.
    o_ref[...] = jnp.log(z) - t * pl.reciprocal(z, approx=True)


def local_entropy(k_local, q_local):
    """Entropy of the 7x7 local softmax for each of N = B*L positions -> (N,)."""
    N, k2, C = k_local.shape
    budget = _vmem_budget_bytes()
    c_chunk = min(C, LANE)
    # per-row bytes: double-buffered k (bf16) + q (f32) blocks + f32 chunk temp
    # + small (tn, 49)-sized intermediates.
    per_row = 2 * (k2 * C * 2 + C * 4) + k2 * c_chunk * 4 + 6 * k2 * 4
    tn_cap = 512 if budget > 64 * 1024 * 1024 else 256   # v5e/v6e : v7x
    tn = max(LANE, min(tn_cap, ((budget // 2) // per_row) // LANE * LANE))
    tn = min(tn, _round_up(N, LANE))
    n_pad = _round_up(N, tn)                              # pad N to the tile so the
    if n_pad != N:                                        # big tile is always used
        k_local = jnp.pad(k_local, ((0, n_pad - N), (0, 0), (0, 0)))
        q_local = jnp.pad(q_local, ((0, n_pad - N), (0, 0)))
    out = pl.pallas_call(
        functools.partial(_local_entropy_kernel, c_chunk=c_chunk),
        grid=(n_pad // tn,),
        in_specs=[pl.BlockSpec((tn, k2, C), lambda i: (i, 0, 0)),
                  pl.BlockSpec((tn, C), lambda i: (i, 0))],
        out_specs=pl.BlockSpec((1, tn), lambda i: (0, i)),   # lane-dense writeback
        out_shape=jax.ShapeDtypeStruct((1, n_pad), jnp.float32),
        compiler_params=pltpu.CompilerParams(
            dimension_semantics=("parallel",),
            vmem_limit_bytes=budget),
    )(k_local, q_local)
    return out[0, :N]


def _mlp_l2norm_kernel(x_ref, w1_ref, b1_ref, w2_ref, b2_ref, o_ref):
    # y = relu(x @ W1^T + b1) @ W2^T + b2 ; out = y / (||y||_2 + 1e-7)
    # bf16 MXU operands, f32 accumulation; padded columns are exactly zero.
    x = x_ref[...].astype(jnp.bfloat16)
    h = jnp.dot(x, w1_ref[...], preferred_element_type=jnp.float32) + b1_ref[...]
    h = jnp.maximum(h, 0.0)
    y = jnp.dot(h.astype(jnp.bfloat16), w2_ref[...],
                preferred_element_type=jnp.float32) + b2_ref[...]
    norm = jnp.sqrt(jnp.sum(y * y, axis=1, keepdims=True))
    o_ref[...] = y * pl.reciprocal(norm + 1e-7, approx=True)


def mlp_l2norm(x, w1t, b1, w2t, b2, out_dim):
    """Fused Linear->ReLU->Linear->L2norm, tiled over rows. Returns (N, out_dim)."""
    N, C = x.shape
    Hp = w1t.shape[1]
    Op = w2t.shape[1]
    budget = _vmem_budget_bytes()
    tn_cap = 512 if budget > 64 * 1024 * 1024 else 256
    tn = min(tn_cap, _round_up(N, SUB))
    n_pad = _round_up(N, tn)
    if n_pad != N:
        x = jnp.pad(x, ((0, n_pad - N), (0, 0)))
    out = pl.pallas_call(
        _mlp_l2norm_kernel,
        grid=(n_pad // tn,),
        in_specs=[pl.BlockSpec((tn, C), lambda i: (i, 0)),
                  pl.BlockSpec((C, Hp), lambda i: (0, 0)),
                  pl.BlockSpec((1, Hp), lambda i: (0, 0)),
                  pl.BlockSpec((Hp, Op), lambda i: (0, 0)),
                  pl.BlockSpec((1, Op), lambda i: (0, 0))],
        out_specs=pl.BlockSpec((tn, Op), lambda i: (i, 0)),
        out_shape=jax.ShapeDtypeStruct((n_pad, Op), jnp.float32),
        compiler_params=pltpu.CompilerParams(
            dimension_semantics=("parallel",),
            vmem_limit_bytes=budget),
    )(x, w1t, b1, w2t, b2)
    return out[:N, :out_dim]


def _l2norm_kernel(x_ref, o_ref):
    x = x_ref[...]
    norm = jnp.sqrt(jnp.sum(x * x, axis=1, keepdims=True))
    o_ref[...] = x * pl.reciprocal(norm + 1e-7, approx=True)


def l2_normalize(x):
    """Standalone L2 norm over channels (use_mlp=False path), tiled over rows."""
    N, C = x.shape
    budget = _vmem_budget_bytes()
    tn_cap = 512 if budget > 64 * 1024 * 1024 else 256
    tn = min(tn_cap, _round_up(N, SUB))
    n_pad = _round_up(N, tn)
    if n_pad != N:
        x = jnp.pad(x, ((0, n_pad - N), (0, 0)))
    out = pl.pallas_call(
        _l2norm_kernel,
        grid=(n_pad // tn,),
        in_specs=[pl.BlockSpec((tn, C), lambda i: (i, 0))],
        out_specs=pl.BlockSpec((tn, C), lambda i: (i, 0)),
        out_shape=jax.ShapeDtypeStruct((n_pad, C), jnp.float32),
        compiler_params=pltpu.CompilerParams(
            dimension_semantics=("parallel",),
            vmem_limit_bytes=budget),
    )(x)
    return out[:N]


# ---------------------------------------------------------------------------
# Plain-JAX glue
# ---------------------------------------------------------------------------

def unfold_local_keys(x, k, pad):
    """Reference's feat_k_local tensor of shape (B*H*W, k*k, C), in bf16.

    Reproduces F.unfold(x, kernel_size=k, stride=1, padding=pad) followed by the
    reference's permute(0, 2, 1).reshape(B, L, k*k, C), which reinterprets the
    channel-major C*k*k axis as (k*k, C) — i.e. it scrambles channels and kernel
    positions.  That exact scramble is preserved.  The padded map is transposed
    to NHWC once and the k*k taps are plain slices of it; the tensor is emitted
    in bf16 to halve the dominant HBM traffic of this path (dots accumulate f32).
    """
    B, C, H, W = x.shape
    xp = jnp.pad(x, ((0, 0), (0, 0), (pad, pad), (pad, pad)))
    xp = jnp.transpose(xp, (0, 2, 3, 1)).astype(jnp.bfloat16)   # NHWC once
    Ho = H + 2 * pad - k + 1
    Wo = W + 2 * pad - k + 1
    taps = [xp[:, i:i + Ho, j:j + Wo, :] for i in range(k) for j in range(k)]
    t = jnp.stack(taps, axis=-1)                     # (B, Ho, Wo, C, k*k) channel-major
    n = B * Ho * Wo
    return t.reshape(n, C * k * k).reshape(n, k * k, C)


class PatchSampleF:
    """JAX/Pallas port of the PyTorch PatchSampleF module (use_mlp supported)."""

    def __init__(self, use_mlp=True, nc=NC, init_gain=INIT_GAIN):
        self.use_mlp = use_mlp
        self.nc = nc
        self.init_gain = init_gain
        self.mlp_init = False
        self.mlps = {}

    def create_mlp(self, feats, key):
        # nn.Linear(input_nc, nc) -> ReLU -> nn.Linear(nc, nc); 'normal'(0, 0.02)
        # init, bias 0.  Hidden/output widths are zero-padded to a multiple of
        # 128 so MXU tiles / stores are full lane width (padded columns are
        # exactly zero and contribute nothing to the norm); weights are stored
        # bf16 for the MXU (f32 accumulation in-kernel).
        hp = _round_up(self.nc, LANE)
        for mlp_id, feat in enumerate(feats):
            input_nc = feat.shape[1]
            key, k1, k2 = jax.random.split(key, 3)
            w1 = self.init_gain * jax.random.normal(k1, (self.nc, input_nc), jnp.float32)
            w2 = self.init_gain * jax.random.normal(k2, (self.nc, self.nc), jnp.float32)
            w1t = jnp.zeros((input_nc, hp), jnp.float32).at[:, :self.nc].set(w1.T)
            w2t = jnp.zeros((hp, hp), jnp.float32).at[:self.nc, :self.nc].set(w2.T)
            b1 = jnp.zeros((1, hp), jnp.float32)
            b2 = jnp.zeros((1, hp), jnp.float32)
            self.mlps[mlp_id] = (w1t.astype(jnp.bfloat16), b1,
                                 w2t.astype(jnp.bfloat16), b2)
        self.mlp_init = True

    def __call__(self, feats, num_patches=64, patch_ids=None, attn_mats=None, key=None):
        if key is None:
            key = jax.random.PRNGKey(0)
        return_ids, return_feats, return_mats = [], [], []

        if self.use_mlp and not self.mlp_init:
            key, sub = jax.random.split(key)
            self.create_mlp(feats, sub)

        for feat_id, feat in enumerate(feats):
            B, C, H, W = feat.shape
            feat_reshape = jnp.transpose(feat, (0, 2, 3, 1)).reshape(B, H * W, C)

            if num_patches > 0:
                if feat_id < 3:
                    if patch_ids is not None:
                        patch_id = patch_ids[feat_id]
                    else:
                        key, sub = jax.random.split(key)
                        patch_id = jax.random.permutation(sub, H * W)
                        patch_id = patch_id[:int(min(num_patches, patch_id.shape[0]))]
                    x_sample = feat_reshape[:, patch_id, :].reshape(-1, C)
                    attn_qs = jnp.zeros((1,), jnp.float32)
                else:
                    feat_bf = feat_reshape.astype(jnp.bfloat16)
                    if attn_mats is not None:
                        attn_qs = attn_mats[feat_id]
                        feat_out = bmm(attn_qs, feat_bf)                 # (B, P, C)
                    else:
                        L = H * W
                        feat_k_local = unfold_local_keys(feat, K_S, K_S // 2)  # (B*L,49,C) bf16
                        feat_q_local = feat_reshape.reshape(B * L, C)
                        entropy = local_entropy(feat_k_local, feat_q_local).reshape(B, L)
                        index = jnp.argsort(entropy, axis=1)             # ascending, like torch.sort
                        patch_id_arr = index[:, :num_patches]            # (B, P)
                        q_sel = jnp.take_along_axis(
                            feat_bf, patch_id_arr[:, :, None], axis=1)   # (B, P, C)
                        # L-tiled online-softmax: never forms the (L, L) matrix and
                        # per-step VMEM is independent of L.
                        attn_qs, feat_out = select_attention(q_sel, feat_bf)
                    x_sample = feat_out.reshape(-1, C)
                    patch_id = []
            else:
                # TODO(synk): num_patches==0 path (3-D l2norm over the spatial axis
                # + reshape back to NCHW) is not exercised in this demo.
                x_sample = feat_reshape.reshape(-1, C)
                patch_id = []

            if self.use_mlp:
                w1t, b1, w2t, b2 = self.mlps[feat_id]
                x_sample = mlp_l2norm(x_sample, w1t, b1, w2t, b2, self.nc)
            else:
                x_sample = l2_normalize(x_sample)

            return_ids.append(patch_id)
            return_mats.append(attn_qs)
            return_feats.append(x_sample)

        return return_feats, return_ids, return_mats


# ---------------------------------------------------------------------------
# Demo
# ---------------------------------------------------------------------------

if __name__ == "__main__":
    key = jax.random.PRNGKey(0)
    k0, k1, k2, k3, kfwd = jax.random.split(key, 5)

    # 4 feature levels: first 3 go through random-patch sampling, the 4th
    # through the local-entropy / global-attention query-selection path.
    feats = [
        jax.random.normal(k0, (2, 4, 16, 16), jnp.float32),
        jax.random.normal(k1, (2, 8, 8, 8), jnp.float32),
        jax.random.normal(k2, (2, 8, 8, 8), jnp.float32),
        jax.random.normal(k3, (2, 8, 8, 8), jnp.float32),
    ]
    num_patches = 16

    sampler = PatchSampleF(use_mlp=True, nc=NC)
    feats_out, ids_out, mats_out = sampler(feats, num_patches=num_patches, key=kfwd)

    feats_out = [jax.block_until_ready(f) for f in feats_out]
    mats_out = [jax.block_until_ready(m) for m in mats_out]

    # sanity checks
    for f in feats_out:
        assert f.shape == (2 * num_patches, NC), f.shape
        assert bool(jnp.all(jnp.isfinite(f)))
    assert mats_out[0].shape == (1,)
    assert mats_out[3].shape == (2, num_patches, 8 * 8)
    assert bool(jnp.all(jnp.isfinite(mats_out[3])))
    # each selected row of the global attention should sum to ~1
    row_sums = jnp.sum(mats_out[3], axis=-1)
    assert bool(jnp.all(jnp.abs(row_sums - 1.0) < 1e-2)), row_sums
    assert ids_out[0].shape == (num_patches,)
    assert ids_out[3] == []

    print("KERNEL_OK")
</pallas_src>

<mosaic_0001>
module attributes {stable_mosaic.version = 11 : i64} {
  func.func @_mlp_l2norm_kernel(%arg0: i32, %arg1: memref<32x4xf32, #tpu.memory_space<vmem>>, %arg2: memref<4x128xbf16, #tpu.memory_space<vmem>>, %arg3: memref<1x128xf32, #tpu.memory_space<vmem>>, %arg4: memref<128x128xbf16, #tpu.memory_space<vmem>>, %arg5: memref<1x128xf32, #tpu.memory_space<vmem>>, %arg6: memref<32x128xf32, #tpu.memory_space<vmem>>) attributes {dimension_semantics = [#tpu.dimension_semantics<parallel>], iteration_bounds = array<i64: 1>, scalar_prefetch = 0 : i64, scratch_operands = 0 : i64, tpu.core_type = #tpu.core_type<tc>, window_params = [{transform_indices = @transform_0, window_bounds = array<i64: 32, 4>}, {pipeline_mode = #tpu.pipeline_mode<synchronous>, transform_indices = @transform_1, window_bounds = array<i64: 4, 128>}, {pipeline_mode = #tpu.pipeline_mode<synchronous>, transform_indices = @transform_2, window_bounds = array<i64: 1, 128>}, {pipeline_mode = #tpu.pipeline_mode<synchronous>, transform_indices = @transform_3, window_bounds = array<i64: 128, 128>}, {pipeline_mode = #tpu.pipeline_mode<synchronous>, transform_indices = @transform_4, window_bounds = array<i64: 1, 128>}, {transform_indices = @transform_5, window_bounds = array<i64: 32, 128>}]} {
    %c0 = arith.constant 0 : index
    %c0_0 = arith.constant 0 : index
    %0 = vector.load %arg1[%c0, %c0_0] : memref<32x4xf32, #tpu.memory_space<vmem>>, vector<32x4xf32>
    %1 = arith.truncf %0 : vector<32x4xf32> to vector<32x4xbf16>
    %c0_1 = arith.constant 0 : index
    %c0_2 = arith.constant 0 : index
    %2 = vector.load %arg2[%c0_1, %c0_2] : memref<4x128xbf16, #tpu.memory_space<vmem>>, vector<4x128xbf16>
    %cst = arith.constant dense<0.000000e+00> : vector<32x128xf32>
    %3 = tpu.matmul %1, %2, %cst {dimension_numbers = #tpu.dot_dimension_numbers<[1], [0], [0], [1], [0, 0, 1, 1], [], []>} : vector<32x4xbf16>, vector<4x128xbf16>, vector<32x128xf32> -> vector<32x128xf32>
    %c0_3 = arith.constant 0 : index
    %c0_4 = arith.constant 0 : index
    %4 = vector.load %arg3[%c0_3, %c0_4] : memref<1x128xf32, #tpu.memory_space<vmem>>, vector<1x128xf32>
    %5 = vector.broadcast %4 : vector<1x128xf32> to vector<32x128xf32>
    %6 = arith.addf %3, %5 : vector<32x128xf32>
    %cst_5 = arith.constant 0.000000e+00 : f32
    %7 = vector.broadcast %cst_5 : f32 to vector<32x128xf32>
    %8 = arith.maximumf %6, %7 : vector<32x128xf32>
    %9 = arith.truncf %8 : vector<32x128xf32> to vector<32x128xbf16>
    %c0_6 = arith.constant 0 : index
    %c0_7 = arith.constant 0 : index
    %10 = vector.load %arg4[%c0_6, %c0_7] : memref<128x128xbf16, #tpu.memory_space<vmem>>, vector<128x128xbf16>
    %cst_8 = arith.constant dense<0.000000e+00> : vector<32x128xf32>
    %11 = tpu.matmul %9, %10, %cst_8 {dimension_numbers = #tpu.dot_dimension_numbers<[1], [0], [0], [1], [0, 0, 1, 1], [], []>} : vector<32x128xbf16>, vector<128x128xbf16>, vector<32x128xf32> -> vector<32x128xf32>
    %c0_9 = arith.constant 0 : index
    %c0_10 = arith.constant 0 : index
    %12 = vector.load %arg5[%c0_9, %c0_10] : memref<1x128xf32, #tpu.memory_space<vmem>>, vector<1x128xf32>
    %13 = vector.broadcast %12 : vector<1x128xf32> to vector<32x128xf32>
    %14 = arith.addf %11, %13 : vector<32x128xf32>
    %15 = arith.mulf %14, %14 : vector<32x128xf32>
    %cst_11 = arith.constant dense<0.000000e+00> : vector<32xf32>
    %16 = vector.multi_reduction <add>, %15, %cst_11 [1] : vector<32x128xf32> to vector<32xf32>
    %17 = vector.shape_cast %16 : vector<32xf32> to vector<32x1xf32>
    %18 = math.sqrt %17 : vector<32x1xf32>
    %cst_12 = arith.constant 1.000000e-07 : f32
    %19 = vector.broadcast %cst_12 : f32 to vector<32x1xf32>
    %20 = arith.addf %18, %19 : vector<32x1xf32>
    %21 = tpu.reciprocal %20 {approx = true} : vector<32x1xf32> -> vector<32x1xf32>
    %22 = vector.broadcast %21 : vector<32x1xf32> to vector<32x128xf32>
    %23 = arith.mulf %14, %22 : vector<32x128xf32>
    %c0_13 = arith.constant 0 : index
    %c0_14 = arith.constant 0 : index
    %24 = vector.load %arg6[%c0_13, %c0_14] : memref<32x128xf32, #tpu.memory_space<vmem>>, vector<32x128xf32>
    tpu.vector_store %arg6[%c0_13, %c0_14], %23 {strides = array<i32>} : memref<32x128xf32, #tpu.memory_space<vmem>>, vector<32x128xf32>,
    return
  }
  func.func @transform_0(%arg0: i32) -> (i32, i32) {
    %c0_i32 = arith.constant 0 : i32
    %c0_i32_0 = arith.constant 0 : i32
    return %arg0, %c0_i32 : i32, i32
  }
  func.func @transform_1(%arg0: i32) -> (i32, i32) {
    %c0_i32 = arith.constant 0 : i32
    %c0_i32_0 = arith.constant 0 : i32
    %c0_i32_1 = arith.constant 0 : i32
    return %c0_i32, %c0_i32_0 : i32, i32
  }
  func.func @transform_2(%arg0: i32) -> (i32, i32) {
    %c0_i32 = arith.constant 0 : i32
    %c0_i32_0 = arith.constant 0 : i32
    %c0_i32_1 = arith.constant 0 : i32
    return %c0_i32, %c0_i32_0 : i32, i32
  }
  func.func @transform_3(%arg0: i32) -> (i32, i32) {
    %c0_i32 = arith.constant 0 : i32
    %c0_i32_0 = arith.constant 0 : i32
    %c0_i32_1 = arith.constant 0 : i32
    return %c0_i32, %c0_i32_0 : i32, i32
  }
  func.func @transform_4(%arg0: i32) -> (i32, i32) {
    %c0_i32 = arith.constant 0 : i32
    %c0_i32_0 = arith.constant 0 : i32
    %c0_i32_1 = arith.constant 0 : i32
    return %c0_i32, %c0_i32_0 : i32, i32
  }
  func.func @transform_5(%arg0: i32) -> (i32, i32) {
    %c0_i32 = arith.constant 0 : i32
    %c0_i32_0 = arith.constant 0 : i32
    return %arg0, %c0_i32 : i32, i32
  }
}

</mosaic_0001>

<bundles_post_ra>
// kernel: tpu_custom_call.1
= control target key start
LH: loop header
LB: loop body
LE: loop exit
PB: predicated region body
PF: predicated region fallthrough
CT: control target
= control target key end

     0   :  { %10 = vsyncpa [#allocation3], 0  ;;  %s530_s0 = inlined_call_operand.vmem [shape: f32[32,4], index: 0, kind: input, shape index: {}]   ;;  %s531_s1 = inlined_call_operand.vmem [shape: bf16[4,128], index: 1, kind: input, shape index: {}]   ;;  %s532_s2 = inlined_call_operand.vmem [shape: f32[1,128], index: 2, kind: input, shape index: {}]   ;;  %s533_s3 = inlined_call_operand.hbm [shape: bf16[128,128], index: 3, kind: input, shape index: {}]   ;;  %s534_s4 = inlined_call_operand.vmem [shape: f32[1,128], index: 4, kind: input, shape index: {}]   ;;  %s535_s5 = inlined_call_operand.hbm [shape: f32[32,128], index: 5, kind: output, shape index: {}]  }
   0x1   :  { %11 = vsyncpa [#allocation4], 0  ;;  %s439_s18 = smov [#allocation2]   ;;  %s391_s22 = scalar_lea.hbm %s533_s3, 1024 }
   0x2   :  { %s23_s19 = sshll.u32 %s439_s18, 4  ;;  %p392_p0 = scmp.ne.s32.totalorder %s533_s3, %s391_s22  ;;  %s24_s19 = int_to_ptr.vmem [resolvable:$true] %s23_s19 }
   0x3   :  { %p395_p1 = scmp.lt.u32.totalorder %s391_s22, %s533_s3 }
   0x5   :  { %p397_p2 = pnand %p395_p1, %p392_p0 }
   0x7   :  { %400 = shalt.err (!%p397_p2)
}
   0x8   :  { %s401_s27 = scalar_lea.vmem %s24_s19, 1024  ;;  %p406_p4 = scmp.lt.s32.totalorder %s24_s19, %s24_s19 }
   0x9   :  { %p402_p3 = scmp.ne.s32.totalorder %s24_s19, %s401_s27  ;;  %p407_p5 = scmp.lt.s32.totalorder %s401_s27, %s401_s27 }
   0xb   :  { %p408_p6 = por %p407_p5, %p406_p4 }
   0xd   :  { %p409_p7 = pnand %p408_p6, %p402_p3 }
   0xf   :  { %412 = shalt.err (!%p409_p7)
}
  0x10   :  { %s440_s28 = smov 64   ;;  %s441_s29 = smov 4  }
  0x11   :  { %29 = dma.hbm_to_vmem [thread:$0]  %s533_s3, 1024, %s24_s19, [#allocation3], %s440_s28, %s440_s28, %s441_s29  }
  0x12   :  { %435 = dma.done.wait [#allocation3], 1024  }
  0x13   :  { %436 = vsyncadd [#allocation3], 4294966272  ;;  %vm57_vm0 = vcmask 1041408   ;;  %v42_v0 = vld [vmem:[%s531_s1] sm:$0x3]  ;;  %v37_v2 = vld [vmem:[%s530_s0 + $0x8] sm:$0xff] }
  0x14   :  { %v36_v1 = vld [vmem:[%s530_s0] sm:$0xff]  ;;  %vm50_vm1 = vcmask 31744   ;;  %360 = vmatprep.subr.msk.bf16.mxu0 %vm57_vm0, %v42_v0  ;;  %v59_v3 = vsel %vm57_vm0, %v42_v0, 0  ;;  %v38_v5 = vld [vmem:[%s530_s0 + $0x10] sm:$0xff]  ;;  %v39_v6 = vld [vmem:[%s530_s0 + $0x18] sm:$0xff] }
  0x15   :  { %v40_v4 = vpack.c.bf16 %v37_v2, %v36_v1  ;;  %335 = vmatpush3.bf16.msra.mxu0 %v59_v3  ;;  %v41_v7 = vpack.c.bf16 %v39_v6, %v38_v5  ;;  %v367_v8 = vld [vmem:[#allocation2] sm:$0xff]   ;;  %v368_v9 = vld [vmem:[#allocation2 + $0x8] sm:$0xff]   ;;  %v369_v10 = vld [vmem:[#allocation2 + $0x10] sm:$0xff]  }
  0x16   :  { %340 = vmatprep.subr.bf16.mxu1 %v367_v8  ;;  %v370_v11 = vld [vmem:[#allocation2 + $0x18] sm:$0xff]   ;;  %v371_v12 = vld [vmem:[#allocation2 + $0x20] sm:$0xff]   ;;  %v372_v13 = vld [vmem:[#allocation2 + $0x28] sm:$0xff]  }
  0x17   :  { %336 = vmatprep.mubr.msk.bf16.mxu0 %vm50_vm1, %v40_v4  ;;  %341 = vmatpush3.bf16.msra.mxu1 %v367_v8  ;;  %v373_v14 = vld [vmem:[#allocation2 + $0x30] sm:$0xff]   ;;  %v374_v15 = vld [vmem:[#allocation2 + $0x38] sm:$0xff]   ;;  %v309_v16 = vld [vmem:[%s532_s2] ss:$0 sm:$0xff]  ;;  %s442_s2 = smov [#allocation5]  }
  0x18   :  { %337 = vmatmul.mubr.msk.bf16.vlgmr.msra.gmra.mrb[0].mxu0 %vm50_vm1, %v41_v7  ;;  %342 = vmatprep.subr.bf16.mxu1 %v368_v9  ;;  %v312_v31 = vld [vmem:[%s534_s4] ss:$0 sm:$0xff]  ;;  %s297_s4 = sshll.u32 %s442_s2, 4  ;;  %s298_s4 = int_to_ptr.vmem [resolvable:$true] %s297_s4 }
  0x19   :  { %s413_s18 = scalar_lea.vmem %s298_s4, 512  ;;  %p418_p9 = scmp.lt.s32.totalorder %s298_s4, %s298_s4 }
  0x1a   :  { %p414_p8 = scmp.ne.s32.totalorder %s298_s4, %s413_s18  ;;  %p419_p10 = scmp.lt.s32.totalorder %s413_s18, %s413_s18 }
  0x1b   :  { %343 = vmatpush3.bf16.msra.mxu1 %v368_v9 }
  0x1c   :  { %344 = vmatprep.subr.bf16.mxu1 %v369_v10  ;;  %p420_p11 = por %p419_p10, %p418_p9 }
  0x1e   :  { %p421_p12 = pnand %p420_p11, %p414_p8 }
  0x1f   :  { %345 = vmatpush3.bf16.msra.mxu1 %v369_v10 }
  0x20   :  { %346 = vmatprep.subr.bf16.mxu1 %v370_v11 }
  0x23   :  { %347 = vmatpush3.bf16.msra.mxu1 %v370_v11 }
  0x24   :  { %348 = vmatprep.subr.bf16.mxu1 %v371_v12 }
  0x27   :  { %349 = vmatpush3.bf16.msra.mxu1 %v371_v12 }
  0x28   :  { %350 = vmatprep.subr.bf16.mxu1 %v372_v13 }
  0x2b   :  { %351 = vmatpush3.bf16.msra.mxu1 %v372_v13 }
  0x2c   :  { %352 = vmatprep.subr.bf16.mxu1 %v373_v14 }
  0x2f   :  { %353 = vmatpush3.bf16.msra.mxu1 %v373_v14 }
  0x30   :  { %354 = vmatprep.subr.bf16.mxu1 %v374_v15 }
  0x33   :  { %355 = vmatpush3.bf16.msra.mxu1 %v374_v15 }
  0xeb   :  { %v338_v17 = vpop.f32.mrb[0].mxu0 }
  0xec   :  { %v104_v18 = vadd.f32 %v338_v17, %v309_v16  ;;  %v95_v19 = vpop.f32.mrb[1].mxu0 }
  0xed   :  { %v96_v20 = vadd.f32 %v309_v16, %v95_v19  ;;  %v339_v21 = vpop.f32.mrb[2].mxu0 }
  0xee   :  { %v107_v22 = vadd.f32 %v339_v21, %v309_v16  ;;  %v98_v23 = vpop.f32.mrb[3].mxu0  ;;  %v112_v25 = vmax.f32 %v104_v18, 0.0 }
  0xef   :  { %v99_v24 = vadd.f32 %v309_v16, %v98_v23  ;;  %v110_v27 = vmax.f32 %v96_v20, 0.0 }
  0xf0   :  { %v113_v26 = vmax.f32 %v107_v22, 0.0 }
  0xf1   :  { %v111_v28 = vmax.f32 %v99_v24, 0.0 }
  0xf2   :  { %v115_v29 = vpack.c.bf16 %v113_v26, %v112_v25 }
  0xf3   :  { %v114_v30 = vpack.c.bf16 %v111_v28, %v110_v27 }
  0xf5   :  { %356 = vmatprep.mubr.bf16.mxu1 %v114_v30 }
  0xf6   :  { %357 = vmatmul.mubr.bf16.vlgmr.msra.gmra.mrb[0].mxu1 %v115_v29 }
 0x1c9   :  { %v358_v32 = vpop.f32.mrb[0].mxu1 }
 0x1ca   :  { %v230_v33 = vadd.f32 %v358_v32, %v312_v31  ;;  %v221_v34 = vpop.f32.mrb[1].mxu1 }
 0x1cb   :  { %v222_v35 = vadd.f32 %v312_v31, %v221_v34  ;;  %v359_v36 = vpop.f32.mrb[2].mxu1 }
 0x1cc   :  { %v508_v37 = vadd.f32 %v359_v36, %v312_v31  ;;  %v224_v38 = vpop.f32.mrb[3].mxu1  ;;  %v238_v39 = vmul.f32 %v230_v33, %v230_v33 }
 0x1cd   :  { %v510_v40 = vadd.f32 %v312_v31, %v224_v38  ;;  %v236_v41 = vmul.f32 %v222_v35, %v222_v35 }
 0x1ce   :  { %244 = vadd.xlane.f32.xlu1 %v238_v39  ;;  %v239_v42 = vmul.f32 %v508_v37, %v508_v37 }
 0x1cf   :  { %240 = vadd.xlane.f32.xlu0 %v236_v41  ;;  %v237_v43 = vmul.f32 %v510_v40, %v510_v40 }
 0x1d2   :  { %246 = vadd.xlane.f32.xlu1 %v239_v42 }
 0x1d3   :  { %242 = vadd.xlane.f32.xlu0 %v237_v43 }
 0x25b   :  { %v245_v44 = vpop.xlane.xlu1 %244 }
 0x25c   :  { %375 = vrsqrt.f32 %v245_v44  ;;  %v241_v45 = vpop.xlane.xlu0 %240  ;;  %vm264_vm2 = vcmp.eq.f32.partialorder %v245_v44, inf  ;;  %v267_v51 = vand.u32 2147483648, %v245_v44  ;;  %vm266_vm3 = vcmp.eq.f32.partialorder %v245_v44, 0.0 }
 0x25d   :  { %377 = vrsqrt.f32 %v241_v45  ;;  %vm250_vm4 = vcmp.eq.f32.partialorder %v241_v45, inf  ;;  %v253_v54 = vand.u32 2147483648, %v241_v45  ;;  %vm252_vm5 = vcmp.eq.f32.partialorder %v241_v45, 0.0 }
 0x25f   :  { %v247_v46 = vpop.xlane.xlu1 %246 }
 0x260   :  { %379 = vrsqrt.f32 %v247_v46  ;;  %v243_v47 = vpop.xlane.xlu0 %242  ;;  %vm271_vm6 = vcmp.eq.f32.partialorder %v247_v46, inf  ;;  %vm273_vm7 = vcmp.eq.f32.partialorder %v247_v46, 0.0  ;;  %v274_v63 = vand.u32 2147483648, %v247_v46 }
 0x261   :  { %381 = vrsqrt.f32 %v243_v47  ;;  %vm257_vm8 = vcmp.eq.f32.partialorder %v243_v47, inf  ;;  %v260_v2 = vand.u32 2147483648, %v243_v47  ;;  %vm259_vm9 = vcmp.eq.f32.partialorder %v243_v47, 0.0 }
 0x266   :  { %v376_v48 = vpop.eup %375 }
 0x267   :  { %v378_v49 = vpop.eup %377  ;;  %v263_v50 = vmul.f32 %v376_v48, %v245_v44 }
 0x268   :  { %v249_v52 = vmul.f32 %v378_v49, %v241_v45 }
 0x269   :  { %v265_v53 = vsel %vm264_vm2, %v245_v44, %v263_v50 }
 0x26a   :  { %v380_v55 = vpop.eup %379  ;;  %v268_v56 = vsel %vm266_vm3, %v267_v51, %v265_v53  ;;  %v251_v57 = vsel %vm250_vm4, %v241_v45, %v249_v52 }
 0x26b   :  { %v382_v58 = vpop.eup %381  ;;  %v278_v59 = vadd.f32 1e-07, %v268_v56  ;;  %v254_v60 = vsel %vm252_vm5, %v253_v54, %v251_v57  ;;  %v270_v61 = vmul.f32 %v380_v55, %v247_v46 }
 0x26c   :  { %v276_v62 = vadd.f32 1e-07, %v254_v60  ;;  %v256_v0 = vmul.f32 %v382_v58, %v243_v47 }
 0x26d   :  { %383 = vrcp.f32 %v278_v59  ;;  %v272_v1 = vsel %vm271_vm6, %v247_v46, %v270_v61 }
 0x26e   :  { %385 = vrcp.f32 %v276_v62  ;;  %v275_v3 = vsel %vm273_vm7, %v274_v63, %v272_v1  ;;  %v258_v4 = vsel %vm257_vm8, %v243_v47, %v256_v0 }
 0x26f   :  { %v279_v5 = vadd.f32 1e-07, %v275_v3  ;;  %v261_v6 = vsel %vm259_vm9, %v260_v2, %v258_v4 }
 0x270   :  { %v277_v7 = vadd.f32 1e-07, %v261_v6 }
 0x271   :  { %387 = vrcp.f32 %v279_v5 }
 0x272   :  { %389 = vrcp.f32 %v277_v7 }
 0x277   :  { %v384_v8 = vpop.eup %383 }
 0x278   :  { %v386_v9 = vpop.eup %385  ;;  %v286_v10 = vmul.f32 %v384_v8, %v230_v33 }
 0x279   :  { %v284_v11 = vmul.f32 %v386_v9, %v222_v35 }
 0x27a   :  { %290 = vst [vmem:[#allocation5 + $0x10] sm:$0xff] %v286_v10 }
 0x27b   :  { %v388_v12 = vpop.eup %387  ;;  %288 = vst [vmem:[#allocation5] sm:$0xff] %v284_v11 }
 0x27c   :  { %v390_v13 = vpop.eup %389  ;;  %v287_v14 = vmul.f32 %v388_v12, %v508_v37 }
 0x27d   :  { %v285_v15 = vmul.f32 %v390_v13, %v510_v40 }
 0x27e   :  { %291 = vst [vmem:[#allocation5 + $0x18] sm:$0xff] %v287_v14 }
 0x27f   :  { %289 = vst [vmem:[#allocation5 + $0x8] sm:$0xff] %v285_v15 }
 0x280   :  { %424 = shalt.err (!%p421_p12)
}
 0x281   :  { %s425_s21 = scalar_lea.hbm %s535_s5, 512 }
 0x282   :  { %p426_p13 = scmp.ne.s32.totalorder %s535_s5, %s425_s21  ;;  %p429_p0 = scmp.lt.u32.totalorder %s425_s21, %s535_s5 }
 0x284   :  { %p431_p1 = pnand %p429_p0, %p426_p13 }
 0x286   :  { %434 = shalt.err (!%p431_p1)
}
 0x287   :  { %s443_s26 = smov 128   ;;  %s444_s27 = smov 8  }
 0x288   :  { %303 = dma.vmem_to_hbm [thread:$0]  %s298_s4, 512, %s535_s5, [#allocation4], %s443_s26, %s443_s26, %s444_s27  }
 0x289   :  { %437 = dma.done.wait [#allocation4], 512  }
 0x28a   :  { %438 = vsyncadd [#allocation4], 4294966784 }
 0x28b   :  { %307 = vsyncpa [#allocation3], 1 }
 0x28c   :  { %308 = vsyncpa [#allocation4], 1 }

</bundles_post_ra>
